<compile_context>
chip_gen: v5e
topology: v5e:2x2
jax: 0.10.0
libtpu: 0.0.40
codegen_flags: <defaults>
</compile_context>

<pallas_src>
import functools

import jax
import jax.numpy as jnp
from jax import lax
from jax.experimental import pallas as pl
from jax.experimental.pallas import tpu as pltpu


def _dice_kernel(score_ref, labels_ref, out_i_ref, out_z_ref, out_y_ref,
                 *, n_classes, use_softmax, hw, tile_hw):
    m = pl.program_id(1)
    num_m = pl.num_programs(1)

    # Per-batch output blocks are resident across the spatial-tile axis; zero
    # them on the first tile of each batch item.
    @pl.when(m == 0)
    def _init():
        out_i_ref[...] = jnp.zeros_like(out_i_ref)
        out_z_ref[...] = jnp.zeros_like(out_z_ref)
        out_y_ref[...] = jnp.zeros_like(out_y_ref)

    s = score_ref[...].astype(jnp.float32)            # (C, tile_hw)
    labels = labels_ref[...].astype(jnp.int32)        # (1, tile_hw)

    if use_softmax:
        s_max = jnp.max(s, axis=0, keepdims=True)
        e = jnp.exp(s - s_max)
        denom = jnp.sum(e, axis=0, keepdims=True)      # (1, tile_hw)
        # approx=True -> EUP vrcp path (the EUP slot has lots of slack here);
        # accuracy impact on a softmax denominator is far below tolerance.
        s = e * pl.reciprocal(denom, approx=True)

    class_ids = lax.broadcasted_iota(jnp.int32, (n_classes, tile_hw), 0)
    eq = labels == class_ids                           # (C, tile_hw) bool

    def accumulate(s_v, eq_v):
        # Lane reductions (XLU) into the resident (C, 1) per-batch partials.
        out_i_ref[...] += jnp.sum(jnp.where(eq_v, s_v, 0.0),
                                  axis=1, keepdims=True)
        out_z_ref[...] += jnp.sum(s_v * s_v, axis=1, keepdims=True)
        out_y_ref[...] += jnp.sum(jnp.where(eq_v, 1.0, 0.0),
                                  axis=1, keepdims=True)

    needs_mask = (hw % tile_hw) != 0
    if needs_mask:
        # Only the last spatial tile is partial -> keep mask work off the
        # common path.
        @pl.when(m != num_m - 1)
        def _full_tile():
            accumulate(s, eq)

        @pl.when(m == num_m - 1)
        def _partial_tile():
            col = m * tile_hw + lax.broadcasted_iota(jnp.int32, (1, tile_hw), 1)
            valid = col < hw                           # (1, tile_hw) bool
            # jnp.where (not multiply) so garbage/NaN in padded columns cannot
            # leak into the sums.
            accumulate(jnp.where(valid, s, 0.0), jnp.logical_and(eq, valid))
    else:
        accumulate(s, eq)


def dice_loss(inputs, target, n_classes, weight=None, softmax=False,
              tile_hw=None, score_dtype=None):
    """Pallas DiceLoss.forward.  inputs: (N, C, H, W) float, target: (N, H, W) int."""
    N, C, H, W = inputs.shape
    assert C == n_classes, f"inputs channels {C} != n_classes {n_classes}"
    HW = H * W

    # Free reshapes of the native NCHW layout — no transpose, no pad copies.
    score = inputs.reshape(N, C, HW)
    if score_dtype is not None:
        score = score.astype(score_dtype)   # optional bf16 ingestion (~2x HBM)
    # Labels travel as int8 when class ids fit (<128), cutting label HBM
    # traffic 4x.  Values >= 128 would wrap, but a wrapped value can never
    # equal a valid class id < 128, so semantics match the reference.
    label_dtype = jnp.int8 if n_classes < 128 else jnp.int32
    labels = target.reshape(N, 1, HW).astype(label_dtype)

    score_bytes = jnp.dtype(score.dtype).itemsize
    lbl_bytes = jnp.dtype(label_dtype).itemsize

    # Tile heuristic: the working set is just the double-buffered score block
    # + labels (accumulators are now (C, 1)); keep it around ~12 MiB so it fits
    # with headroom on every generation (incl. v7x 64 MiB VMEM / 32 MiB scoped).
    if tile_hw is None:
        budget_bytes = 12 * 1024 * 1024
        bytes_per_col = 2 * (score_bytes * C + lbl_bytes)
        tile_hw = min(32768, max(512, budget_bytes // bytes_per_col))
    tile_hw = max(128, (tile_hw // 128) * 128)
    hw_pad128 = pl.cdiv(HW, 128) * 128
    tile_hw = min(tile_hw, hw_pad128)

    grid = (N, pl.cdiv(HW, tile_hw))

    kernel = functools.partial(_dice_kernel, n_classes=n_classes,
                               use_softmax=softmax, hw=HW, tile_hw=tile_hw)

    part_shape = jax.ShapeDtypeStruct((N, C, 1), jnp.float32)
    part_spec = pl.BlockSpec((None, C, 1), lambda n, m: (n, 0, 0))

    inter_p, z_p, y_p = pl.pallas_call(
        kernel,
        out_shape=(part_shape, part_shape, part_shape),
        grid_spec=pltpu.PrefetchScalarGridSpec(
            num_scalar_prefetch=0,
            grid=grid,
            in_specs=[
                # score: (N, C, HW) -> kernel sees (C, tile_hw)
                pl.BlockSpec((None, C, tile_hw), lambda n, m: (n, 0, m)),
                # labels: (N, 1, HW) -> kernel sees (1, tile_hw)
                pl.BlockSpec((None, 1, tile_hw), lambda n, m: (n, 0, m)),
            ],
            out_specs=(part_spec, part_spec, part_spec),
        ),
        compiler_params=pltpu.CompilerParams(
            dimension_semantics=("parallel", "arbitrary"),
            vmem_limit_bytes=32 * 1024 * 1024),
    )(score, labels)

    # Tiny per-class combination in JAX: batch-sum -> dice -> weight -> mean.
    if weight is None:
        w = jnp.ones((C,), jnp.float32)
    else:
        w = jnp.asarray(weight, jnp.float32).reshape(C)
    smooth = 1e-5
    intersect = jnp.sum(inter_p[..., 0], axis=0)       # (C,)
    z_sum = jnp.sum(z_p[..., 0], axis=0)               # (C,)
    y_sum = jnp.sum(y_p[..., 0], axis=0)               # (C,)
    dice = 1.0 - (2.0 * intersect + smooth) / (z_sum + y_sum + smooth)
    return jnp.sum(dice * w) / n_classes


def dice_loss_ref(inputs, target, n_classes, weight=None, softmax=False):
    """Pure-JAX reference mirroring the PyTorch module."""
    if softmax:
        inputs = jax.nn.softmax(inputs, axis=1)
    one_hot = (target[:, None, :, :] ==
               jnp.arange(n_classes)[None, :, None, None]).astype(jnp.float32)
    if weight is None:
        weight = [1.0] * n_classes
    smooth = 1e-5
    loss = 0.0
    for i in range(n_classes):
        s = inputs[:, i]
        t = one_hot[:, i]
        intersect = jnp.sum(s * t)
        y_sum = jnp.sum(t * t)
        z_sum = jnp.sum(s * s)
        dice = 1.0 - (2.0 * intersect + smooth) / (z_sum + y_sum + smooth)
        loss = loss + dice * weight[i]
    return loss / n_classes


if __name__ == "__main__":
    n_classes = 4
    N, H, W = 2, 16, 16

    key = jax.random.PRNGKey(0)
    k_in, k_tgt = jax.random.split(key)
    inputs = jax.random.normal(k_in, (N, n_classes, H, W), dtype=jnp.float32)
    target = jax.random.randint(k_tgt, (N, H, W), 0, n_classes, dtype=jnp.int32)

    # softmax=False path (raw scores, like the module's default)
    loss0 = dice_loss(inputs, target, n_classes, softmax=False)
    ref0 = dice_loss_ref(inputs, target, n_classes, softmax=False)

    # softmax=True path (channel softmax inside the kernel)
    loss1 = dice_loss(inputs, target, n_classes, softmax=True)
    ref1 = dice_loss_ref(inputs, target, n_classes, softmax=True)

    # non-uniform per-class weights
    wts = [0.5, 1.0, 2.0, 0.25]
    loss2 = dice_loss(inputs, target, n_classes, weight=wts, softmax=True)
    ref2 = dice_loss_ref(inputs, target, n_classes, weight=wts, softmax=True)

    # optional bf16 score ingestion (HBM-bound kernel -> ~2x less traffic);
    # compared against the f32 reference with a loose tolerance.
    loss3 = dice_loss(inputs, target, n_classes, softmax=True,
                      score_dtype=jnp.bfloat16)

    jax.block_until_ready((loss0, loss1, loss2, loss3))

    assert jnp.allclose(loss0, ref0, rtol=1e-4, atol=1e-5), (loss0, ref0)
    assert jnp.allclose(loss1, ref1, rtol=1e-4, atol=1e-5), (loss1, ref1)
    assert jnp.allclose(loss2, ref2, rtol=1e-4, atol=1e-5), (loss2, ref2)
    assert jnp.allclose(loss3, ref1, rtol=5e-2, atol=1e-3), (loss3, ref1)

    print("KERNEL_OK")
</pallas_src>

<mosaic_0001>
module attributes {stable_mosaic.version = 11 : i64} {
  func.func @_dice_kernel(%arg0: i32, %arg1: i32, %arg2: memref<1x4x256xf32, #tpu.memory_space<vmem>>, %arg3: memref<1x1x256xi8, #tpu.memory_space<vmem>>, %arg4: memref<1x4x1xf32, #tpu.memory_space<vmem>>, %arg5: memref<1x4x1xf32, #tpu.memory_space<vmem>>, %arg6: memref<1x4x1xf32, #tpu.memory_space<vmem>>) attributes {dimension_semantics = [#tpu.dimension_semantics<parallel>, #tpu.dimension_semantics<arbitrary>], iteration_bounds = array<i64: 2, 1>, scalar_prefetch = 0 : i64, scratch_operands = 0 : i64, tpu.core_type = #tpu.core_type<tc>, window_params = [{transform_indices = @transform_0, window_bounds = array<i64: 1, 4, 256>}, {transform_indices = @transform_1, window_bounds = array<i64: 1, 1, 256>}, {transform_indices = @transform_2, window_bounds = array<i64: 1, 4, 1>}, {transform_indices = @transform_3, window_bounds = array<i64: 1, 4, 1>}, {transform_indices = @transform_4, window_bounds = array<i64: 1, 4, 1>}]} {
    %c0_i32 = arith.constant 0 : i32
    %0 = arith.cmpi eq, %arg1, %c0_i32 : i32
    %1 = arith.extui %0 : i1 to i32
    %c0_i32_0 = arith.constant 0 : i32
    %2 = arith.cmpi ne, %1, %c0_i32_0 : i32
    scf.if %2 {
      %cst_29 = arith.constant 0.000000e+00 : f32
      %41 = vector.broadcast %cst_29 : f32 to vector<4x1xf32>
      %c0_30 = arith.constant 0 : index
      %c0_31 = arith.constant 0 : index
      %c0_32 = arith.constant 0 : index
      %42 = vector.load %arg4[%c0_30, %c0_31, %c0_32] : memref<1x4x1xf32, #tpu.memory_space<vmem>>, vector<1x4x1xf32>
      %43 = vector.shape_cast %42 : vector<1x4x1xf32> to vector<4x1xf32>
      %44 = vector.shape_cast %41 : vector<4x1xf32> to vector<1x4x1xf32>
      tpu.vector_store %arg4[%c0_30, %c0_31, %c0_32], %44 {strides = array<i32>} : memref<1x4x1xf32, #tpu.memory_space<vmem>>, vector<1x4x1xf32>,
      %cst_33 = arith.constant 0.000000e+00 : f32
      %45 = vector.broadcast %cst_33 : f32 to vector<4x1xf32>
      %c0_34 = arith.constant 0 : index
      %c0_35 = arith.constant 0 : index
      %c0_36 = arith.constant 0 : index
      %46 = vector.load %arg5[%c0_34, %c0_35, %c0_36] : memref<1x4x1xf32, #tpu.memory_space<vmem>>, vector<1x4x1xf32>
      %47 = vector.shape_cast %46 : vector<1x4x1xf32> to vector<4x1xf32>
      %48 = vector.shape_cast %45 : vector<4x1xf32> to vector<1x4x1xf32>
      tpu.vector_store %arg5[%c0_34, %c0_35, %c0_36], %48 {strides = array<i32>} : memref<1x4x1xf32, #tpu.memory_space<vmem>>, vector<1x4x1xf32>,
      %cst_37 = arith.constant 0.000000e+00 : f32
      %49 = vector.broadcast %cst_37 : f32 to vector<4x1xf32>
      %c0_38 = arith.constant 0 : index
      %c0_39 = arith.constant 0 : index
      %c0_40 = arith.constant 0 : index
      %50 = vector.load %arg6[%c0_38, %c0_39, %c0_40] : memref<1x4x1xf32, #tpu.memory_space<vmem>>, vector<1x4x1xf32>
      %51 = vector.shape_cast %50 : vector<1x4x1xf32> to vector<4x1xf32>
      %52 = vector.shape_cast %49 : vector<4x1xf32> to vector<1x4x1xf32>
      tpu.vector_store %arg6[%c0_38, %c0_39, %c0_40], %52 {strides = array<i32>} : memref<1x4x1xf32, #tpu.memory_space<vmem>>, vector<1x4x1xf32>,
    } else {
    }
    %c0 = arith.constant 0 : index
    %c0_1 = arith.constant 0 : index
    %c0_2 = arith.constant 0 : index
    %3 = vector.load %arg2[%c0, %c0_1, %c0_2] : memref<1x4x256xf32, #tpu.memory_space<vmem>>, vector<1x4x256xf32>
    %4 = vector.shape_cast %3 : vector<1x4x256xf32> to vector<4x256xf32>
    %c0_3 = arith.constant 0 : index
    %c0_4 = arith.constant 0 : index
    %c0_5 = arith.constant 0 : index
    %5 = vector.load %arg3[%c0_3, %c0_4, %c0_5] : memref<1x1x256xi8, #tpu.memory_space<vmem>>, vector<1x1x256xi8>
    %6 = vector.shape_cast %5 : vector<1x1x256xi8> to vector<1x256xi8>
    %7 = arith.extsi %6 : vector<1x256xi8> to vector<1x256xi32>
    %8 = tpu.iota {dimensions = array<i32: 0>} : vector<4x256xi32>
    %9 = vector.broadcast %7 : vector<1x256xi32> to vector<4x256xi32>
    %10 = arith.cmpi eq, %9, %8 : vector<4x256xi32>
    %c0_6 = arith.constant 0 : index
    %c0_7 = arith.constant 0 : index
    %c0_8 = arith.constant 0 : index
    %11 = vector.load %arg4[%c0_6, %c0_7, %c0_8] : memref<1x4x1xf32, #tpu.memory_space<vmem>>, vector<1x4x1xf32>
    %12 = vector.shape_cast %11 : vector<1x4x1xf32> to vector<4x1xf32>
    %cst = arith.constant 0.000000e+00 : f32
    %13 = vector.broadcast %cst : f32 to vector<4x256xf32>
    %14 = arith.select %10, %4, %13 : vector<4x256xi1>, vector<4x256xf32>
    %cst_9 = arith.constant dense<0.000000e+00> : vector<4xf32>
    %15 = vector.multi_reduction <add>, %14, %cst_9 [1] : vector<4x256xf32> to vector<4xf32>
    %16 = vector.shape_cast %15 : vector<4xf32> to vector<4x1xf32>
    %17 = arith.addf %12, %16 : vector<4x1xf32>
    %c0_10 = arith.constant 0 : index
    %c0_11 = arith.constant 0 : index
    %c0_12 = arith.constant 0 : index
    %18 = vector.load %arg4[%c0_10, %c0_11, %c0_12] : memref<1x4x1xf32, #tpu.memory_space<vmem>>, vector<1x4x1xf32>
    %19 = vector.shape_cast %18 : vector<1x4x1xf32> to vector<4x1xf32>
    %20 = vector.shape_cast %17 : vector<4x1xf32> to vector<1x4x1xf32>
    tpu.vector_store %arg4[%c0_10, %c0_11, %c0_12], %20 {strides = array<i32>} : memref<1x4x1xf32, #tpu.memory_space<vmem>>, vector<1x4x1xf32>,
    %c0_13 = arith.constant 0 : index
    %c0_14 = arith.constant 0 : index
    %c0_15 = arith.constant 0 : index
    %21 = vector.load %arg5[%c0_13, %c0_14, %c0_15] : memref<1x4x1xf32, #tpu.memory_space<vmem>>, vector<1x4x1xf32>
    %22 = vector.shape_cast %21 : vector<1x4x1xf32> to vector<4x1xf32>
    %23 = arith.mulf %4, %4 : vector<4x256xf32>
    %cst_16 = arith.constant dense<0.000000e+00> : vector<4xf32>
    %24 = vector.multi_reduction <add>, %23, %cst_16 [1] : vector<4x256xf32> to vector<4xf32>
    %25 = vector.shape_cast %24 : vector<4xf32> to vector<4x1xf32>
    %26 = arith.addf %22, %25 : vector<4x1xf32>
    %c0_17 = arith.constant 0 : index
    %c0_18 = arith.constant 0 : index
    %c0_19 = arith.constant 0 : index
    %27 = vector.load %arg5[%c0_17, %c0_18, %c0_19] : memref<1x4x1xf32, #tpu.memory_space<vmem>>, vector<1x4x1xf32>
    %28 = vector.shape_cast %27 : vector<1x4x1xf32> to vector<4x1xf32>
    %29 = vector.shape_cast %26 : vector<4x1xf32> to vector<1x4x1xf32>
    tpu.vector_store %arg5[%c0_17, %c0_18, %c0_19], %29 {strides = array<i32>} : memref<1x4x1xf32, #tpu.memory_space<vmem>>, vector<1x4x1xf32>,
    %c0_20 = arith.constant 0 : index
    %c0_21 = arith.constant 0 : index
    %c0_22 = arith.constant 0 : index
    %30 = vector.load %arg6[%c0_20, %c0_21, %c0_22] : memref<1x4x1xf32, #tpu.memory_space<vmem>>, vector<1x4x1xf32>
    %31 = vector.shape_cast %30 : vector<1x4x1xf32> to vector<4x1xf32>
    %cst_23 = arith.constant 1.000000e+00 : f32
    %cst_24 = arith.constant 0.000000e+00 : f32
    %32 = vector.broadcast %cst_23 : f32 to vector<4x256xf32>
    %33 = vector.broadcast %cst_24 : f32 to vector<4x256xf32>
    %34 = arith.select %10, %32, %33 : vector<4x256xi1>, vector<4x256xf32>
    %cst_25 = arith.constant dense<0.000000e+00> : vector<4xf32>
    %35 = vector.multi_reduction <add>, %34, %cst_25 [1] : vector<4x256xf32> to vector<4xf32>
    %36 = vector.shape_cast %35 : vector<4xf32> to vector<4x1xf32>
    %37 = arith.addf %31, %36 : vector<4x1xf32>
    %c0_26 = arith.constant 0 : index
    %c0_27 = arith.constant 0 : index
    %c0_28 = arith.constant 0 : index
    %38 = vector.load %arg6[%c0_26, %c0_27, %c0_28] : memref<1x4x1xf32, #tpu.memory_space<vmem>>, vector<1x4x1xf32>
    %39 = vector.shape_cast %38 : vector<1x4x1xf32> to vector<4x1xf32>
    %40 = vector.shape_cast %37 : vector<4x1xf32> to vector<1x4x1xf32>
    tpu.vector_store %arg6[%c0_26, %c0_27, %c0_28], %40 {strides = array<i32>} : memref<1x4x1xf32, #tpu.memory_space<vmem>>, vector<1x4x1xf32>,
    return
  }
  func.func @transform_0(%arg0: i32, %arg1: i32) -> (i32, i32, i32) {
    %c0_i32 = arith.constant 0 : i32
    %c0_i32_0 = arith.constant 0 : i32
    return %arg0, %c0_i32, %arg1 : i32, i32, i32
  }
  func.func @transform_1(%arg0: i32, %arg1: i32) -> (i32, i32, i32) {
    %c0_i32 = arith.constant 0 : i32
    %c0_i32_0 = arith.constant 0 : i32
    return %arg0, %c0_i32, %arg1 : i32, i32, i32
  }
  func.func @transform_2(%arg0: i32, %arg1: i32) -> (i32, i32, i32) {
    %c0_i32 = arith.constant 0 : i32
    %c0_i32_0 = arith.constant 0 : i32
    %c0_i32_1 = arith.constant 0 : i32
    return %arg0, %c0_i32, %c0_i32_0 : i32, i32, i32
  }
  func.func @transform_3(%arg0: i32, %arg1: i32) -> (i32, i32, i32) {
    %c0_i32 = arith.constant 0 : i32
    %c0_i32_0 = arith.constant 0 : i32
    %c0_i32_1 = arith.constant 0 : i32
    return %arg0, %c0_i32, %c0_i32_0 : i32, i32, i32
  }
  func.func @transform_4(%arg0: i32, %arg1: i32) -> (i32, i32, i32) {
    %c0_i32 = arith.constant 0 : i32
    %c0_i32_0 = arith.constant 0 : i32
    %c0_i32_1 = arith.constant 0 : i32
    return %arg0, %c0_i32, %c0_i32_0 : i32, i32, i32
  }
}

</mosaic_0001>

<bundles_post_ra>
// kernel: tpu_custom_call.1
= control target key start
LH: loop header
LB: loop body
LE: loop exit
PB: predicated region body
PF: predicated region fallthrough
CT: control target
= control target key end

     0   :  { %10 = vsyncpa [#allocation3], 0  ;;  %s806_s0 = inlined_call_operand.hbm [shape: f32[2,4,256], index: 0, kind: input, shape index: {}]   ;;  %s807_s1 = inlined_call_operand.vmem [shape: s8[2,1,256], index: 1, kind: input, shape index: {}]   ;;  %s808_s2 = inlined_call_operand.vmem [shape: f32[2,4,1], index: 2, kind: output, shape index: {0}]   ;;  %s809_s3 = inlined_call_operand.vmem [shape: f32[2,4,1], index: 3, kind: output, shape index: {1}]   ;;  %s810_s4 = inlined_call_operand.vmem [shape: f32[2,4,1], index: 4, kind: output, shape index: {2}]  }
   0x1   :  { %12 = vsyncpa [#allocation3 + $0x1], 0  ;;  %s682_s15 = smov 0   ;;  %s684_s16 = smov 0  }
   0x2   :  { %s686_s17 = smov 0   ;;  %s688_s18 = smov 0  }
   0x3   :  { %s690_s19 = smov 0   ;;  %s692_s20 = smov 0  }
   0x4 LB: > { %s502_s21 = sadd.s32 4294967295, %s654_s20   ;;  %s30_s22 = sadd.s32 1, %s650_s19  ;;  %s654_s20 = sphi %s692_s20, %s18_s20   ;;  %s650_s19 = sphi %s690_s19, %s817_s19   ;;  %s646_s18 = sphi %s688_s18, %s816_s18   ;;  %s642_s17 = sphi %s686_s17, %s815_s17   ;;  %s638_s16 = sphi %s684_s16, %s814_s16   ;;  %s634_s15 = sphi %s682_s15, %s813_s15  }
   0x5   : > { %p32_p0 = scmp.ge.s32.totalorder %s30_s22, 2  ;;  %s39_s23 = sadd.s32 1, %s642_s17 }
   0x6   : > { %p46_p1 = scmp.ne.s32.totalorder %s642_s17, %s638_s16  ;;  %p47_p2 = scmp.eq.s32.totalorder %s654_s20, 0 }
   0x7   : > { %s819_s22 = smov (%p32_p0, %s30_s22), 0  ;;  %p52_p4 = scmp.ne.s32.totalorder %s638_s16, %s634_s15 }
   0x8   : > { %p718_p3 = por %p47_p2, %p46_p1  ;;  %s34_s25 = ssub.s32 %s650_s19, %s819_s22 }
   0x9   : > { %p53_p5 = scmp.eq.s32.totalorder %s502_s21, 0  ;;  %p37_p6 = scmp.eq.s32.totalorder %s34_s25, 0 }
   0xa   : > { %p524_p8 = scmp.lt.s32.totalorder %s654_s20, 2  ;;  %s182_s28 = sand.u32 1, %s642_s17  }
   0xb   : > { %p725_p7 = por %p53_p5, %p52_p4  ;;  %s517_s29 = sshll.u32 %s650_s19, 3 }
   0xc   : > { %s731_s27 = scalar_select %p37_p6, %s642_s17, %s39_s23  }
   0xd   : > { %s506_s30 = sshll.u32 %s182_s28, 3  ;;  %s193_s7 = scalar_lea.hbm %s806_s0, %s517_s29 }
   0xe   : > { %s195_s8 = sshll.u32 %s193_s7, 4  ;;  %s186_s9 = scalar_lea.vmem [#allocation2], %s506_s30  ;;  %s196_s8 = int_to_ptr.hbm [resolvable:$true] %s195_s8 }
   0xf   : > { %s197_s10 = sshll.u32 %s186_s9, 4  ;;  %p521_p9 = pnand %p524_p8, %p718_p3  ;;  %s198_s10 = int_to_ptr.vmem [resolvable:$true] %s197_s10 }
  0x10   : > { %p509_p10 = scmp.ge.s32.totalorder %s654_s20, 1  ;;  %p214_p11 = scmp.lt.s32.totalorder %s654_s20, 3 }
  0x11   : > { %s183_s11 = scalar_lea.sflag [#allocation3], %s182_s28 }
  0x12   : > { %523 = dma.hbm_to_vmem [thread:$0]  (!%p521_p9), %s196_s8, 128, %s198_s10, %s183_s11  }
  0x13   : > { %p215_p12 = pnand %p509_p10, %p214_p11 }
  0x14   : > { %s220_s12 = sand.u32 (!%p215_p12), 1, %s638_s16  }
  0x15   : > { %218 = sbr.rel (%p215_p12) target bundleno = 171 (0xab), region = 28  ;;  %s510_s13 = sshll.u32 (!%p215_p12), %s220_s12, 3 }
  0x16   : > { %s221_s14 = scalar_lea.sflag (!%p215_p12), [#allocation3], %s220_s12  ;;  %s224_s15 = scalar_lea.vmem (!%p215_p12), [#allocation2], %s510_s13 }
  0x1a   : > { %629 = dma.done.wait (%p725_p7), %s221_s14, 128  }
  0x1b   : > { %631 = vsyncadd (%p725_p7), %s221_s14, 4294967168  ;;  %p267_p13 = scmp.lt.s32.totalorder %s646_s18, 1  ;;  %vm291_vm0 = vcmask 3072   ;;  %v298_v0 = vlaneseq  ;;  %v656_v1 = vmov 0.0   ;;  %v295_v2 = vld [vmem:[%s224_s15] sm:$0xff]  ;;  %vm315_vm3 = vcmask 1043456  }
  0x1c   : > { %308 = vst [vmem:[#allocation1] ss:$2 sm:$0xff] %v295_v2  ;;  %v325_v10 = vmul.f32 %v295_v2, %v295_v2 }
  0x1d   : > { %s821_s18 = smov (!%p267_p13, %s646_s18), 1  ;;  %v299_v5 = vshrl.u32 %v298_v0, 7 }
  0x1e   : > { %s511_s21 = sshll.u32 %s821_s18, 1  ;;  %s512_s23 = sshll.u32 %s821_s18, 2 }
  0x1f   : > { %s273_s28 = scalar_lea.vmem %s807_s1, %s511_s21  ;;  %s755_s5 = scalar_lea.vmem %s808_s2, %s512_s23 }
  0x20   : > { %292 = vst.msk [vmem:[%s755_s5] sm:$0xf] %vm291_vm0, %v656_v1  ;;  %v296_v3 = vld [vmem:[%s273_s28] sm:$0x3]  ;;  %s762_s18 = scalar_lea.vmem %s810_s4, %s512_s23  ;;  %s767_s9 = scalar_lea.vmem %s809_s3, %s512_s23 }
  0x21   : > { %v297_v4 = vunpack.c.0.s8 %v296_v3  ;;  %294 = vst.msk [vmem:[%s762_s18] sm:$0xf] %vm291_vm0, %v656_v1 }
  0x22   : > { %293 = vst.msk [vmem:[%s767_s9] sm:$0xf] %vm291_vm0, %v656_v1 }
  0x23   : > { %v300_v6 = vperm.slane %v297_v4, 0  ;;  %v301_v7 = vperm.slane %v297_v4, 4  ;;  %v309_v11 = vld.sshfl [vmem:[#allocation1] sm:$0xff pattern:$0x75316420] }
  0x24   : > { %v310_v12 = vld.sshfl [vmem:[#allocation1 + $0x8] sm:$0xff pattern:$0x75316420] }
  0x25   : > { %v302_v8 = vperm.slane %v300_v6, 0  ;;  %v303_v9 = vperm.slane %v301_v7, 0  ;;  %327 = vst [vmem:[#allocation1] ss:$2 sm:$0xff] %v325_v10 }
  0x27   : > { %vm304_vm1 = vcmp.eq.s32.totalorder %v302_v8, %v299_v5  ;;  %vm305_vm2 = vcmp.eq.s32.totalorder %v303_v9, %v299_v5  ;;  %v306_v28 = vld [vmem:[%s755_s5] sm:$0xf] }
  0x28   : > { %v313_v13 = vsel %vm304_vm1, %v309_v11, 0.0  ;;  %v314_v14 = vsel %vm305_vm2, %v310_v12, 0.0  ;;  %v340_v15 = vsel %vm304_vm1, 1.0, %v656_v1  ;;  %v341_v16 = vsel %vm305_vm2, 1.0, %v656_v1  ;;  %v339_v29 = vld [vmem:[%s762_s18] sm:$0xf] }
  0x29   : > { %v316_v17 = vsel %vm315_vm3, %v313_v13, 0.0  ;;  %v317_v18 = vsel %vm315_vm3, %v314_v14, 0.0  ;;  %v342_v19 = vsel %vm315_vm3, %v340_v15, 0.0  ;;  %v343_v20 = vsel %vm315_vm3, %v341_v16, 0.0  ;;  %v324_v34 = vld [vmem:[%s767_s9] sm:$0xf] }
  0x2a   : > { %v318_v21 = vadd.f32 %v317_v18, %v316_v17  ;;  %v344_v22 = vadd.f32 %v343_v20, %v342_v19 }
  0x2c   : > { %319 = vadd.xlane.f32.xlu0 %v318_v21  ;;  %345 = vadd.xlane.f32.xlu1 %v344_v22  ;;  %v328_v23 = vld.sshfl [vmem:[#allocation1] sm:$0xff pattern:$0x75316420]  ;;  %v329_v24 = vld.sshfl [vmem:[#allocation1 + $0x8] sm:$0xff pattern:$0x75316420] }
  0x2d   : > { %v332_v25 = vsel %vm315_vm3, %v328_v23, 0.0  ;;  %v333_v26 = vsel %vm315_vm3, %v329_v24, 0.0 }
  0x2e   : > { %v334_v27 = vadd.f32 %v333_v26, %v332_v25 }
  0x34   : > { %335 = vadd.xlane.f32.xlu0 %v334_v27 }
  0x9f   : > { %v320_v30 = vpop.xlane.xlu0 %319  ;;  %v346_v31 = vpop.xlane.xlu1 %345 }
  0xa0   : > { %v321_v32 = vadd.f32 %v320_v30, %v306_v28  ;;  %v347_v33 = vadd.f32 %v346_v31, %v339_v29 }
  0xa2   : > { %323 = vst.msk [vmem:[%s755_s5] sm:$0xf] %vm291_vm0, %v321_v32 }
  0xa3   : > { %348 = vst.msk [vmem:[%s762_s18] sm:$0xf] %vm291_vm0, %v347_v33 }
  0xa7   : > { %v336_v35 = vpop.xlane.xlu0 %335 }
  0xa8   : > { %v337_v36 = vadd.f32 %v336_v35, %v324_v34 }
  0xaa   : > { %338 = vst.msk [vmem:[%s767_s9] sm:$0xf] %vm291_vm0, %v337_v36 }
  0xab PF: > { %s18_s20 = sadd.s32 1, %s654_s20   ;;  %s813_s15 = smov %s638_s16 }
  0xac   : > { %p15_p0 = scmp.ge.s32.totalorder %s18_s20, 4   ;;  %s814_s16 = smov %s642_s17 }
  0xad   : > { %s815_s17 = smov %s731_s27  ;;  %s816_s18 = smov %s650_s19 }
  0xae   : > { %s817_s19 = smov %s819_s22  ;;  %17 = sbr.rel (!%p15_p0) target bundleno = 4 (0x4), region = 99 }
  0xb3   :  { %396 = vsyncpa [#allocation3], 1 }
  0xb4   :  { %398 = vsyncpa [#allocation3 + $0x1], 1 }

</bundles_post_ra>
